<compile_context>
chip_gen: v7x
topology: tpu7x:2x2x1
jax: 0.10.0
libtpu: 0.0.40
codegen_flags: <defaults>
</compile_context>

<pallas_src>
import functools

import jax
import jax.numpy as jnp
from jax.experimental import pallas as pl
from jax.experimental.pallas import tpu as pltpu

VOCAB_LEN = 32
BN_EPS = 1e-5


# ----------------------------------------------------------------------------
# Static shape bookkeeping
# ----------------------------------------------------------------------------
def _conv_dims(conv_cfgs, embedding_dim, input_len):
    dims = []
    cin, lin = embedding_dim, input_len
    for cfg in conv_cfgs:
        cout, k, s = cfg["out_channels"], cfg["kernel_size"], cfg["stride"]
        pk, ps = cfg["pooling_kernel"], cfg["pooling_stride"]
        lconv = (lin - k) // s + 1
        lp = (lconv - pk) // ps + 1
        dims.append(dict(cin=cin, cout=cout, k=k, s=s, pk=pk, ps=ps,
                         lin=lin, lconv=lconv, lp=lp))
        cin, lin = cout, lp
    return dims, cin, lin            # per-layer dims, feature channels, feature length


# ----------------------------------------------------------------------------
# Single fused forward kernel
# ----------------------------------------------------------------------------
def make_fused_forward(batch, input_len, embedding_dim, conv_cfgs, dense_widths,
                       out_size):
    B = batch
    dims, feat_c, feat_l = _conv_dims(conv_cfgs, embedding_dim, input_len)
    widths = list(dense_widths) + [out_size]
    n_conv, n_lin = len(dims), len(widths)

    def kernel(*refs):
        it = iter(refs)
        x0 = next(it)                                            # (E, Lin*B)
        conv_p = [(next(it), next(it), next(it)) for _ in range(n_conv)]
        lin_p = [(next(it), next(it)) for _ in range(n_lin)]
        out_ref = next(it)                                       # (out_size, B)
        scratch = list(it)

        # ---------------- conv / pool / BN / ReLU stack ----------------
        cur = x0                                                 # (Cin, Lin*B) batch-minor
        for li, (d, (wr, gamma, beta)) in enumerate(zip(dims, conv_p)):
            patch, conv, act = scratch[3 * li:3 * li + 3]
            Cin, Cout, K, s = d["cin"], d["cout"], d["k"], d["s"]
            Lc, Lp, pk, ps = d["lconv"], d["lp"], d["pk"], d["ps"]

            # im2col patches: patch[k*Cin + c, l*B + b] = x[c, (l*s + k)*B + b]
            for k in range(K):
                if s == 1:                                       # contiguous window per tap
                    patch[pl.ds(k * Cin, Cin), :] = cur[:, pl.ds(k * B, Lc * B)]
                else:                                            # general stride path
                    for l in range(Lc):
                        patch[pl.ds(k * Cin, Cin), pl.ds(l * B, B)] = (
                            cur[:, pl.ds((l * s + k) * B, B)])

            # Conv1d == one MXU matmul per layer.  Conv bias is intentionally omitted:
            # bias commutes with max-pool and is cancelled by the train-mode BN mean.
            conv[...] = jnp.dot(wr[...], patch[...],
                                preferred_element_type=jnp.float32)

            # MaxPool1d: each pooling window is a contiguous B-wide column block.
            for p in range(Lp):
                w0 = p * ps * B
                m = conv[:, pl.ds(w0, B)]
                for j in range(1, pk):
                    m = jnp.maximum(m, conv[:, pl.ds(w0 + j * B, B)])
                act[:, pl.ds(p * B, B)] = m

            # BatchNorm1d (training-mode stats over batch*length, per channel) + ReLU.
            a = act[...]                                         # (Cout, Lp*B)
            mean = jnp.mean(a, axis=1, keepdims=True)
            cent = a - mean
            var = jnp.mean(cent * cent, axis=1, keepdims=True)
            y = cent * jax.lax.rsqrt(var + BN_EPS) * gamma[...] + beta[...]
            act[...] = jnp.maximum(y, 0.0)
            cur = act

        # ---------------- dense stack, transposed layout (features, B) ----------------
        # First linear folds the (C, Lp) -> C*Lp flatten:
        #   h[j, b] = sum_p  W3d[p] @ act[:, p-th batch block]
        w3d, b0 = lin_p[0]
        h = jnp.dot(w3d[0], cur[:, pl.ds(0, B)], preferred_element_type=jnp.float32)
        for p in range(1, feat_l):
            h = h + jnp.dot(w3d[p], cur[:, pl.ds(p * B, B)],
                            preferred_element_type=jnp.float32)
        h = h + b0[...]
        if n_lin > 1:
            h = jnp.maximum(h, 0.0)

        for i in range(1, n_lin):                                # remaining dense + head
            w, b = lin_p[i]
            h = jnp.dot(w[...], h, preferred_element_type=jnp.float32) + b[...]
            if i < n_lin - 1:                                    # ReLU on hidden layers only
                h = jnp.maximum(h, 0.0)

        out_ref[...] = h                                         # (out_size, B)

    n_inputs = 1 + 3 * n_conv + 2 * n_lin
    scratch_shapes = []
    for d in dims:
        scratch_shapes += [
            pltpu.VMEM((d["k"] * d["cin"], d["lconv"] * B), jnp.float32),   # im2col patches
            pltpu.VMEM((d["cout"], d["lconv"] * B), jnp.float32),           # conv output
            pltpu.VMEM((d["cout"], d["lp"] * B), jnp.float32),              # pool/BN/ReLU
        ]

    fused = pl.pallas_call(
        kernel,
        out_shape=jax.ShapeDtypeStruct((out_size, B), jnp.float32),
        in_specs=[pl.BlockSpec(memory_space=pltpu.MemorySpace.VMEM)] * n_inputs,
        out_specs=pl.BlockSpec(memory_space=pltpu.MemorySpace.VMEM),
        scratch_shapes=scratch_shapes,
    )
    return fused


# ----------------------------------------------------------------------------
# One-time parameter preparation (no per-call transposes/reshapes)
# ----------------------------------------------------------------------------
def prepare_params(params, conv_cfgs, input_len, embedding_dim):
    dims, feat_c, feat_l = _conv_dims(conv_cfgs, embedding_dim, input_len)
    flat = []
    for d, cp in zip(dims, params["conv"]):
        cout, cin, k = d["cout"], d["cin"], d["k"]
        # wr[o, k*Cin + c] = w[o, c, k]
        wr = jnp.transpose(cp["w"], (0, 2, 1)).reshape(cout, k * cin)
        flat += [wr, cp["gamma"].reshape(cout, 1), cp["beta"].reshape(cout, 1)]
        # cp["b"] (conv bias) unused: exactly cancelled by train-mode BatchNorm.
    lin = [dict(w=dp["w"], b=dp["b"]) for dp in params["dense"]] + [params["head"]]
    for i, lp_ in enumerate(lin):
        w, b = lp_["w"], lp_["b"]
        fout = w.shape[0]
        if i == 0:
            # fold the flatten: w3d[p, j, c] = w[j, c*feat_l + p]
            w3d = jnp.transpose(w.reshape(fout, feat_c, feat_l), (2, 0, 1))
            flat += [w3d, b.reshape(fout, 1)]
        else:
            flat += [w, b.reshape(fout, 1)]            # native PyTorch (Fout, Fin) layout
    return flat


# ----------------------------------------------------------------------------
# Full forward pass (embedding gather is plain-JAX glue feeding the fused kernel)
# ----------------------------------------------------------------------------
def cnn_actor_forward(state_ids, embedding, flat_params, *, fused):
    B, L = state_ids.shape
    E = embedding.shape[1]
    emb = embedding[state_ids]                                   # (B, L, E) gather
    x0 = jnp.transpose(emb, (2, 1, 0)).reshape(E, L * B)         # batch-minor (E, L*B)
    out_t = fused(x0, *flat_params)                              # (out_size, B)
    return out_t.T                                               # (B, out_size)


# ----------------------------------------------------------------------------
# Pure-JAX reference (PyTorch-faithful math, XLA path) for validation
# ----------------------------------------------------------------------------
def ref_forward(state_ids, params, conv_cfgs):
    emb = params["embedding"][state_ids]
    x = jnp.transpose(emb, (0, 2, 1))
    for cfg, cp in zip(conv_cfgs, params["conv"]):
        w, b = cp["w"], cp["b"]
        Cout, Cin, K = w.shape
        stride = cfg["stride"]
        B, _, L = x.shape
        Lc = (L - K) // stride + 1
        acc = jnp.zeros((B, Cout, Lc), jnp.float32)
        for k in range(K):
            xk = x[:, :, k:k + (Lc - 1) * stride + 1:stride]
            acc = acc + jnp.einsum("oc,bcl->bol", w[:, :, k], xk)
        acc = acc + b[None, :, None]
        pk, ps = cfg["pooling_kernel"], cfg["pooling_stride"]
        Lp = (Lc - pk) // ps + 1
        pooled = acc[:, :, 0:(Lp - 1) * ps + 1:ps]
        for p in range(1, pk):
            pooled = jnp.maximum(pooled, acc[:, :, p:p + (Lp - 1) * ps + 1:ps])
        mean = pooled.mean(axis=(0, 2), keepdims=True)
        var = ((pooled - mean) ** 2).mean(axis=(0, 2), keepdims=True)
        y = (pooled - mean) * jax.lax.rsqrt(var + BN_EPS)
        y = y * cp["gamma"][None, :, None] + cp["beta"][None, :, None]
        x = jnp.maximum(y, 0.0)
    x = x.reshape(x.shape[0], -1)
    for dp in params["dense"]:
        x = jnp.maximum(x @ dp["w"].T + dp["b"], 0.0)
    return x @ params["head"]["w"].T + params["head"]["b"]


# ----------------------------------------------------------------------------
# Main
# ----------------------------------------------------------------------------
if __name__ == "__main__":
    B = 2                    # batch
    L = 16                   # input_string_size
    E = 8                    # embedding_dim
    OUT = 4                  # output_size

    conv_cfgs = [
        dict(out_channels=8, kernel_size=3, stride=1,
             pooling_kernel=2, pooling_stride=2),   # L: 16 -> 14 -> 7
        dict(out_channels=16, kernel_size=2, stride=1,
             pooling_kernel=2, pooling_stride=2),   # L: 7 -> 6 -> 3
    ]
    dense_widths = [32, 32]

    key = jax.random.PRNGKey(0)
    keys = iter(jax.random.split(key, 32))

    params = {}
    params["embedding"] = 0.1 * jax.random.normal(next(keys), (VOCAB_LEN, E),
                                                  jnp.float32)

    params["conv"] = []
    cin, cur_len = E, L
    for cfg in conv_cfgs:
        cout, k = cfg["out_channels"], cfg["kernel_size"]
        params["conv"].append(dict(
            w=0.2 * jax.random.normal(next(keys), (cout, cin, k), jnp.float32),
            b=0.1 * jax.random.normal(next(keys), (cout,), jnp.float32),
            gamma=1.0 + 0.1 * jax.random.normal(next(keys), (cout,), jnp.float32),
            beta=0.1 * jax.random.normal(next(keys), (cout,), jnp.float32),
        ))
        cur_len = (cur_len - k) // cfg["stride"] + 1
        cur_len = (cur_len - cfg["pooling_kernel"]) // cfg["pooling_stride"] + 1
        cin = cout
    conv_output_shape = cin * cur_len

    params["dense"] = []
    fin = conv_output_shape
    for width in dense_widths:
        params["dense"].append(dict(
            w=0.2 * jax.random.normal(next(keys), (width, fin), jnp.float32),
            b=0.1 * jax.random.normal(next(keys), (width,), jnp.float32),
        ))
        fin = width
    params["head"] = dict(
        w=0.2 * jax.random.normal(next(keys), (OUT, fin), jnp.float32),
        b=0.1 * jax.random.normal(next(keys), (OUT,), jnp.float32),
    )

    # deterministic token-id input (the "path string" after utils.str2array())
    state_ids = jax.random.randint(next(keys), (B, L), 0, VOCAB_LEN, jnp.int32)

    fused = make_fused_forward(B, L, E, conv_cfgs, dense_widths, OUT)
    flat_params = prepare_params(params, conv_cfgs, L, E)
    forward = jax.jit(functools.partial(cnn_actor_forward, fused=fused))

    out = forward(state_ids, params["embedding"], flat_params)
    out = jax.block_until_ready(out)

    ref = ref_forward(state_ids, params, conv_cfgs)
    assert out.shape == (B, OUT), out.shape
    assert jnp.allclose(out, ref, atol=1e-3, rtol=1e-3), (out, ref)

    print("KERNEL_OK")
</pallas_src>

<mosaic_0001>
module attributes {stable_mosaic.version = 11 : i64} {
  func.func @kernel(%arg0: memref<8x32xf32, #tpu.memory_space<vmem>>, %arg1: memref<8x24xf32, #tpu.memory_space<vmem>>, %arg2: memref<8x1xf32, #tpu.memory_space<vmem>>, %arg3: memref<8x1xf32, #tpu.memory_space<vmem>>, %arg4: memref<16x16xf32, #tpu.memory_space<vmem>>, %arg5: memref<16x1xf32, #tpu.memory_space<vmem>>, %arg6: memref<16x1xf32, #tpu.memory_space<vmem>>, %arg7: memref<3x32x16xf32, #tpu.memory_space<vmem>>, %arg8: memref<32x1xf32, #tpu.memory_space<vmem>>, %arg9: memref<32x32xf32, #tpu.memory_space<vmem>>, %arg10: memref<32x1xf32, #tpu.memory_space<vmem>>, %arg11: memref<4x32xf32, #tpu.memory_space<vmem>>, %arg12: memref<4x1xf32, #tpu.memory_space<vmem>>, %arg13: memref<4x2xf32, #tpu.memory_space<vmem>>, %arg14: memref<24x28xf32, #tpu.memory_space<vmem>>, %arg15: memref<8x28xf32, #tpu.memory_space<vmem>>, %arg16: memref<8x14xf32, #tpu.memory_space<vmem>>, %arg17: memref<16x12xf32, #tpu.memory_space<vmem>>, %arg18: memref<16x12xf32, #tpu.memory_space<vmem>>, %arg19: memref<16x6xf32, #tpu.memory_space<vmem>>) attributes {dimension_semantics = [], scalar_prefetch = 0 : i64, scratch_operands = 6 : i64, tpu.core_type = #tpu.core_type<tc>} {
    %c0 = arith.constant 0 : index
    %c0_0 = arith.constant 0 : index
    %0 = vector.load %arg0[%c0, %c0_0] : memref<8x32xf32, #tpu.memory_space<vmem>>, vector<8x28xf32>
    %c0_1 = arith.constant 0 : index
    %c0_2 = arith.constant 0 : index
    %1 = vector.load %arg14[%c0_1, %c0_2] : memref<24x28xf32, #tpu.memory_space<vmem>>, vector<8x28xf32>
    tpu.vector_store %arg14[%c0_1, %c0_2], %0 {strides = array<i32>} : memref<24x28xf32, #tpu.memory_space<vmem>>, vector<8x28xf32>,
    %c0_3 = arith.constant 0 : index
    %c2 = arith.constant 2 : index
    %2 = vector.load %arg0[%c0_3, %c2] : memref<8x32xf32, #tpu.memory_space<vmem>>, vector<8x28xf32>
    %c8 = arith.constant 8 : index
    %c0_4 = arith.constant 0 : index
    %3 = vector.load %arg14[%c8, %c0_4] : memref<24x28xf32, #tpu.memory_space<vmem>>, vector<8x28xf32>
    tpu.vector_store %arg14[%c8, %c0_4], %2 {strides = array<i32>} : memref<24x28xf32, #tpu.memory_space<vmem>>, vector<8x28xf32>,
    %c0_5 = arith.constant 0 : index
    %c4 = arith.constant 4 : index
    %4 = vector.load %arg0[%c0_5, %c4] : memref<8x32xf32, #tpu.memory_space<vmem>>, vector<8x28xf32>
    %c16 = arith.constant 16 : index
    %c0_6 = arith.constant 0 : index
    %5 = vector.load %arg14[%c16, %c0_6] : memref<24x28xf32, #tpu.memory_space<vmem>>, vector<8x28xf32>
    tpu.vector_store %arg14[%c16, %c0_6], %4 {strides = array<i32>} : memref<24x28xf32, #tpu.memory_space<vmem>>, vector<8x28xf32>,
    %c0_7 = arith.constant 0 : index
    %c0_8 = arith.constant 0 : index
    %6 = vector.load %arg1[%c0_7, %c0_8] : memref<8x24xf32, #tpu.memory_space<vmem>>, vector<8x24xf32>
    %c0_9 = arith.constant 0 : index
    %c0_10 = arith.constant 0 : index
    %7 = vector.load %arg14[%c0_9, %c0_10] : memref<24x28xf32, #tpu.memory_space<vmem>>, vector<24x28xf32>
    %cst = arith.constant dense<0.000000e+00> : vector<8x28xf32>
    %8 = tpu.matmul %6, %7, %cst {dimension_numbers = #tpu.dot_dimension_numbers<[1], [0], [0], [1], [0, 0, 1, 1], [], []>} : vector<8x24xf32>, vector<24x28xf32>, vector<8x28xf32> -> vector<8x28xf32>
    %c0_11 = arith.constant 0 : index
    %c0_12 = arith.constant 0 : index
    %9 = vector.load %arg15[%c0_11, %c0_12] : memref<8x28xf32, #tpu.memory_space<vmem>>, vector<8x28xf32>
    tpu.vector_store %arg15[%c0_11, %c0_12], %8 {strides = array<i32>} : memref<8x28xf32, #tpu.memory_space<vmem>>, vector<8x28xf32>,
    %c0_13 = arith.constant 0 : index
    %c0_14 = arith.constant 0 : index
    %10 = vector.load %arg15[%c0_13, %c0_14] : memref<8x28xf32, #tpu.memory_space<vmem>>, vector<8x2xf32>
    %c0_15 = arith.constant 0 : index
    %c2_16 = arith.constant 2 : index
    %11 = vector.load %arg15[%c0_15, %c2_16] : memref<8x28xf32, #tpu.memory_space<vmem>>, vector<8x2xf32>
    %12 = arith.maximumf %10, %11 : vector<8x2xf32>
    %c0_17 = arith.constant 0 : index
    %c0_18 = arith.constant 0 : index
    %13 = vector.load %arg16[%c0_17, %c0_18] : memref<8x14xf32, #tpu.memory_space<vmem>>, vector<8x2xf32>
    tpu.vector_store %arg16[%c0_17, %c0_18], %12 {strides = array<i32>} : memref<8x14xf32, #tpu.memory_space<vmem>>, vector<8x2xf32>,
    %c0_19 = arith.constant 0 : index
    %c4_20 = arith.constant 4 : index
    %14 = vector.load %arg15[%c0_19, %c4_20] : memref<8x28xf32, #tpu.memory_space<vmem>>, vector<8x2xf32>
    %c0_21 = arith.constant 0 : index
    %c6 = arith.constant 6 : index
    %15 = vector.load %arg15[%c0_21, %c6] : memref<8x28xf32, #tpu.memory_space<vmem>>, vector<8x2xf32>
    %16 = arith.maximumf %14, %15 : vector<8x2xf32>
    %c0_22 = arith.constant 0 : index
    %c2_23 = arith.constant 2 : index
    %17 = vector.load %arg16[%c0_22, %c2_23] : memref<8x14xf32, #tpu.memory_space<vmem>>, vector<8x2xf32>
    tpu.vector_store %arg16[%c0_22, %c2_23], %16 {strides = array<i32>} : memref<8x14xf32, #tpu.memory_space<vmem>>, vector<8x2xf32>,
    %c0_24 = arith.constant 0 : index
    %c8_25 = arith.constant 8 : index
    %18 = vector.load %arg15[%c0_24, %c8_25] : memref<8x28xf32, #tpu.memory_space<vmem>>, vector<8x2xf32>
    %c0_26 = arith.constant 0 : index
    %c10 = arith.constant 10 : index
    %19 = vector.load %arg15[%c0_26, %c10] : memref<8x28xf32, #tpu.memory_space<vmem>>, vector<8x2xf32>
    %20 = arith.maximumf %18, %19 : vector<8x2xf32>
    %c0_27 = arith.constant 0 : index
    %c4_28 = arith.constant 4 : index
    %21 = vector.load %arg16[%c0_27, %c4_28] : memref<8x14xf32, #tpu.memory_space<vmem>>, vector<8x2xf32>
    tpu.vector_store %arg16[%c0_27, %c4_28], %20 {strides = array<i32>} : memref<8x14xf32, #tpu.memory_space<vmem>>, vector<8x2xf32>,
    %c0_29 = arith.constant 0 : index
    %c12 = arith.constant 12 : index
    %22 = vector.load %arg15[%c0_29, %c12] : memref<8x28xf32, #tpu.memory_space<vmem>>, vector<8x2xf32>
    %c0_30 = arith.constant 0 : index
    %c14 = arith.constant 14 : index
    %23 = vector.load %arg15[%c0_30, %c14] : memref<8x28xf32, #tpu.memory_space<vmem>>, vector<8x2xf32>
    %24 = arith.maximumf %22, %23 : vector<8x2xf32>
    %c0_31 = arith.constant 0 : index
    %c6_32 = arith.constant 6 : index
    %25 = vector.load %arg16[%c0_31, %c6_32] : memref<8x14xf32, #tpu.memory_space<vmem>>, vector<8x2xf32>
    tpu.vector_store %arg16[%c0_31, %c6_32], %24 {strides = array<i32>} : memref<8x14xf32, #tpu.memory_space<vmem>>, vector<8x2xf32>,
    %c0_33 = arith.constant 0 : index
    %c16_34 = arith.constant 16 : index
    %26 = vector.load %arg15[%c0_33, %c16_34] : memref<8x28xf32, #tpu.memory_space<vmem>>, vector<8x2xf32>
    %c0_35 = arith.constant 0 : index
    %c18 = arith.constant 18 : index
    %27 = vector.load %arg15[%c0_35, %c18] : memref<8x28xf32, #tpu.memory_space<vmem>>, vector<8x2xf32>
    %28 = arith.maximumf %26, %27 : vector<8x2xf32>
    %c0_36 = arith.constant 0 : index
    %c8_37 = arith.constant 8 : index
    %29 = vector.load %arg16[%c0_36, %c8_37] : memref<8x14xf32, #tpu.memory_space<vmem>>, vector<8x2xf32>
    tpu.vector_store %arg16[%c0_36, %c8_37], %28 {strides = array<i32>} : memref<8x14xf32, #tpu.memory_space<vmem>>, vector<8x2xf32>,
    %c0_38 = arith.constant 0 : index
    %c20 = arith.constant 20 : index
    %30 = vector.load %arg15[%c0_38, %c20] : memref<8x28xf32, #tpu.memory_space<vmem>>, vector<8x2xf32>
    %c0_39 = arith.constant 0 : index
    %c22 = arith.constant 22 : index
    %31 = vector.load %arg15[%c0_39, %c22] : memref<8x28xf32, #tpu.memory_space<vmem>>, vector<8x2xf32>
    %32 = arith.maximumf %30, %31 : vector<8x2xf32>
    %c0_40 = arith.constant 0 : index
    %c10_41 = arith.constant 10 : index
    %33 = vector.load %arg16[%c0_40, %c10_41] : memref<8x14xf32, #tpu.memory_space<vmem>>, vector<8x2xf32>
    tpu.vector_store %arg16[%c0_40, %c10_41], %32 {strides = array<i32>} : memref<8x14xf32, #tpu.memory_space<vmem>>, vector<8x2xf32>,
    %c0_42 = arith.constant 0 : index
    %c24 = arith.constant 24 : index
    %34 = vector.load %arg15[%c0_42, %c24] : memref<8x28xf32, #tpu.memory_space<vmem>>, vector<8x2xf32>
    %c0_43 = arith.constant 0 : index
    %c26 = arith.constant 26 : index
    %35 = vector.load %arg15[%c0_43, %c26] : memref<8x28xf32, #tpu.memory_space<vmem>>, vector<8x2xf32>
    %36 = arith.maximumf %34, %35 : vector<8x2xf32>
    %c0_44 = arith.constant 0 : index
    %c12_45 = arith.constant 12 : index
    %37 = vector.load %arg16[%c0_44, %c12_45] : memref<8x14xf32, #tpu.memory_space<vmem>>, vector<8x2xf32>
    tpu.vector_store %arg16[%c0_44, %c12_45], %36 {strides = array<i32>} : memref<8x14xf32, #tpu.memory_space<vmem>>, vector<8x2xf32>,
    %c0_46 = arith.constant 0 : index
    %c0_47 = arith.constant 0 : index
    %38 = vector.load %arg16[%c0_46, %c0_47] : memref<8x14xf32, #tpu.memory_space<vmem>>, vector<8x14xf32>
    %cst_48 = arith.constant dense<0.000000e+00> : vector<8xf32>
    %39 = vector.multi_reduction <add>, %38, %cst_48 [1] : vector<8x14xf32> to vector<8xf32>
    %40 = vector.shape_cast %39 : vector<8xf32> to vector<8x1xf32>
    %cst_49 = arith.constant 1.400000e+01 : f32
    %41 = vector.broadcast %cst_49 : f32 to vector<8x1xf32>
    %42 = arith.divf %40, %41 : vector<8x1xf32>
    %43 = vector.broadcast %42 : vector<8x1xf32> to vector<8x14xf32>
    %44 = arith.subf %38, %43 : vector<8x14xf32>
    %45 = arith.mulf %44, %44 : vector<8x14xf32>
    %cst_50 = arith.constant dense<0.000000e+00> : vector<8xf32>
    %46 = vector.multi_reduction <add>, %45, %cst_50 [1] : vector<8x14xf32> to vector<8xf32>
    %47 = vector.shape_cast %46 : vector<8xf32> to vector<8x1xf32>
    %cst_51 = arith.constant 1.400000e+01 : f32
    %48 = vector.broadcast %cst_51 : f32 to vector<8x1xf32>
    %49 = arith.divf %47, %48 : vector<8x1xf32>
    %cst_52 = arith.constant 9.99999974E-6 : f32
    %50 = vector.broadcast %cst_52 : f32 to vector<8x1xf32>
    %51 = arith.addf %49, %50 : vector<8x1xf32>
    %52 = math.rsqrt %51 : vector<8x1xf32>
    %53 = vector.broadcast %52 : vector<8x1xf32> to vector<8x14xf32>
    %54 = arith.mulf %44, %53 : vector<8x14xf32>
    %c0_53 = arith.constant 0 : index
    %c0_54 = arith.constant 0 : index
    %55 = vector.load %arg2[%c0_53, %c0_54] : memref<8x1xf32, #tpu.memory_space<vmem>>, vector<8x1xf32>
    %56 = vector.broadcast %55 : vector<8x1xf32> to vector<8x14xf32>
    %57 = arith.mulf %54, %56 : vector<8x14xf32>
    %c0_55 = arith.constant 0 : index
    %c0_56 = arith.constant 0 : index
    %58 = vector.load %arg3[%c0_55, %c0_56] : memref<8x1xf32, #tpu.memory_space<vmem>>, vector<8x1xf32>
    %59 = vector.broadcast %58 : vector<8x1xf32> to vector<8x14xf32>
    %60 = arith.addf %57, %59 : vector<8x14xf32>
    %cst_57 = arith.constant 0.000000e+00 : f32
    %61 = vector.broadcast %cst_57 : f32 to vector<8x14xf32>
    %62 = arith.maximumf %60, %61 : vector<8x14xf32>
    %c0_58 = arith.constant 0 : index
    %c0_59 = arith.constant 0 : index
    %63 = vector.load %arg16[%c0_58, %c0_59] : memref<8x14xf32, #tpu.memory_space<vmem>>, vector<8x14xf32>
    tpu.vector_store %arg16[%c0_58, %c0_59], %62 {strides = array<i32>} : memref<8x14xf32, #tpu.memory_space<vmem>>, vector<8x14xf32>,
    %c0_60 = arith.constant 0 : index
    %c0_61 = arith.constant 0 : index
    %64 = vector.load %arg16[%c0_60, %c0_61] : memref<8x14xf32, #tpu.memory_space<vmem>>, vector<8x12xf32>
    %c0_62 = arith.constant 0 : index
    %c0_63 = arith.constant 0 : index
    %65 = vector.load %arg17[%c0_62, %c0_63] : memref<16x12xf32, #tpu.memory_space<vmem>>, vector<8x12xf32>
    tpu.vector_store %arg17[%c0_62, %c0_63], %64 {strides = array<i32>} : memref<16x12xf32, #tpu.memory_space<vmem>>, vector<8x12xf32>,
    %c0_64 = arith.constant 0 : index
    %c2_65 = arith.constant 2 : index
    %66 = vector.load %arg16[%c0_64, %c2_65] : memref<8x14xf32, #tpu.memory_space<vmem>>, vector<8x12xf32>
    %c8_66 = arith.constant 8 : index
    %c0_67 = arith.constant 0 : index
    %67 = vector.load %arg17[%c8_66, %c0_67] : memref<16x12xf32, #tpu.memory_space<vmem>>, vector<8x12xf32>
    tpu.vector_store %arg17[%c8_66, %c0_67], %66 {strides = array<i32>} : memref<16x12xf32, #tpu.memory_space<vmem>>, vector<8x12xf32>,
    %c0_68 = arith.constant 0 : index
    %c0_69 = arith.constant 0 : index
    %68 = vector.load %arg4[%c0_68, %c0_69] : memref<16x16xf32, #tpu.memory_space<vmem>>, vector<16x16xf32>
    %c0_70 = arith.constant 0 : index
    %c0_71 = arith.constant 0 : index
    %69 = vector.load %arg17[%c0_70, %c0_71] : memref<16x12xf32, #tpu.memory_space<vmem>>, vector<16x12xf32>
    %cst_72 = arith.constant dense<0.000000e+00> : vector<16x12xf32>
    %70 = tpu.matmul %68, %69, %cst_72 {dimension_numbers = #tpu.dot_dimension_numbers<[1], [0], [0], [1], [0, 0, 1, 1], [], []>} : vector<16x16xf32>, vector<16x12xf32>, vector<16x12xf32> -> vector<16x12xf32>
    %c0_73 = arith.constant 0 : index
    %c0_74 = arith.constant 0 : index
    %71 = vector.load %arg18[%c0_73, %c0_74] : memref<16x12xf32, #tpu.memory_space<vmem>>, vector<16x12xf32>
    tpu.vector_store %arg18[%c0_73, %c0_74], %70 {strides = array<i32>} : memref<16x12xf32, #tpu.memory_space<vmem>>, vector<16x12xf32>,
    %c0_75 = arith.constant 0 : index
    %c0_76 = arith.constant 0 : index
    %72 = vector.load %arg18[%c0_75, %c0_76] : memref<16x12xf32, #tpu.memory_space<vmem>>, vector<16x2xf32>
    %c0_77 = arith.constant 0 : index
    %c2_78 = arith.constant 2 : index
    %73 = vector.load %arg18[%c0_77, %c2_78] : memref<16x12xf32, #tpu.memory_space<vmem>>, vector<16x2xf32>
    %74 = arith.maximumf %72, %73 : vector<16x2xf32>
    %c0_79 = arith.constant 0 : index
    %c0_80 = arith.constant 0 : index
    %75 = vector.load %arg19[%c0_79, %c0_80] : memref<16x6xf32, #tpu.memory_space<vmem>>, vector<16x2xf32>
    tpu.vector_store %arg19[%c0_79, %c0_80], %74 {strides = array<i32>} : memref<16x6xf32, #tpu.memory_space<vmem>>, vector<16x2xf32>,
    %c0_81 = arith.constant 0 : index
    %c4_82 = arith.constant 4 : index
    %76 = vector.load %arg18[%c0_81, %c4_82] : memref<16x12xf32, #tpu.memory_space<vmem>>, vector<16x2xf32>
    %c0_83 = arith.constant 0 : index
    %c6_84 = arith.constant 6 : index
    %77 = vector.load %arg18[%c0_83, %c6_84] : memref<16x12xf32, #tpu.memory_space<vmem>>, vector<16x2xf32>
    %78 = arith.maximumf %76, %77 : vector<16x2xf32>
    %c0_85 = arith.constant 0 : index
    %c2_86 = arith.constant 2 : index
    %79 = vector.load %arg19[%c0_85, %c2_86] : memref<16x6xf32, #tpu.memory_space<vmem>>, vector<16x2xf32>
    tpu.vector_store %arg19[%c0_85, %c2_86], %78 {strides = array<i32>} : memref<16x6xf32, #tpu.memory_space<vmem>>, vector<16x2xf32>,
    %c0_87 = arith.constant 0 : index
    %c8_88 = arith.constant 8 : index
    %80 = vector.load %arg18[%c0_87, %c8_88] : memref<16x12xf32, #tpu.memory_space<vmem>>, vector<16x2xf32>
    %c0_89 = arith.constant 0 : index
    %c10_90 = arith.constant 10 : index
    %81 = vector.load %arg18[%c0_89, %c10_90] : memref<16x12xf32, #tpu.memory_space<vmem>>, vector<16x2xf32>
    %82 = arith.maximumf %80, %81 : vector<16x2xf32>
    %c0_91 = arith.constant 0 : index
    %c4_92 = arith.constant 4 : index
    %83 = vector.load %arg19[%c0_91, %c4_92] : memref<16x6xf32, #tpu.memory_space<vmem>>, vector<16x2xf32>
    tpu.vector_store %arg19[%c0_91, %c4_92], %82 {strides = array<i32>} : memref<16x6xf32, #tpu.memory_space<vmem>>, vector<16x2xf32>,
    %c0_93 = arith.constant 0 : index
    %c0_94 = arith.constant 0 : index
    %84 = vector.load %arg19[%c0_93, %c0_94] : memref<16x6xf32, #tpu.memory_space<vmem>>, vector<16x6xf32>
    %cst_95 = arith.constant dense<0.000000e+00> : vector<16xf32>
    %85 = vector.multi_reduction <add>, %84, %cst_95 [1] : vector<16x6xf32> to vector<16xf32>
    %86 = vector.shape_cast %85 : vector<16xf32> to vector<16x1xf32>
    %cst_96 = arith.constant 6.000000e+00 : f32
    %87 = vector.broadcast %cst_96 : f32 to vector<16x1xf32>
    %88 = arith.divf %86, %87 : vector<16x1xf32>
    %89 = vector.broadcast %88 : vector<16x1xf32> to vector<16x6xf32>
    %90 = arith.subf %84, %89 : vector<16x6xf32>
    %91 = arith.mulf %90, %90 : vector<16x6xf32>
    %cst_97 = arith.constant dense<0.000000e+00> : vector<16xf32>
    %92 = vector.multi_reduction <add>, %91, %cst_97 [1] : vector<16x6xf32> to vector<16xf32>
    %93 = vector.shape_cast %92 : vector<16xf32> to vector<16x1xf32>
    %cst_98 = arith.constant 6.000000e+00 : f32
    %94 = vector.broadcast %cst_98 : f32 to vector<16x1xf32>
    %95 = arith.divf %93, %94 : vector<16x1xf32>
    %cst_99 = arith.constant 9.99999974E-6 : f32
    %96 = vector.broadcast %cst_99 : f32 to vector<16x1xf32>
    %97 = arith.addf %95, %96 : vector<16x1xf32>
    %98 = math.rsqrt %97 : vector<16x1xf32>
    %99 = vector.broadcast %98 : vector<16x1xf32> to vector<16x6xf32>
    %100 = arith.mulf %90, %99 : vector<16x6xf32>
    %c0_100 = arith.constant 0 : index
    %c0_101 = arith.constant 0 : index
    %101 = vector.load %arg5[%c0_100, %c0_101] : memref<16x1xf32, #tpu.memory_space<vmem>>, vector<16x1xf32>
    %102 = vector.broadcast %101 : vector<16x1xf32> to vector<16x6xf32>
    %103 = arith.mulf %100, %102 : vector<16x6xf32>
    %c0_102 = arith.constant 0 : index
    %c0_103 = arith.constant 0 : index
    %104 = vector.load %arg6[%c0_102, %c0_103] : memref<16x1xf32, #tpu.memory_space<vmem>>, vector<16x1xf32>
    %105 = vector.broadcast %104 : vector<16x1xf32> to vector<16x6xf32>
    %106 = arith.addf %103, %105 : vector<16x6xf32>
    %cst_104 = arith.constant 0.000000e+00 : f32
    %107 = vector.broadcast %cst_104 : f32 to vector<16x6xf32>
    %108 = arith.maximumf %106, %107 : vector<16x6xf32>
    %c0_105 = arith.constant 0 : index
    %c0_106 = arith.constant 0 : index
    %109 = vector.load %arg19[%c0_105, %c0_106] : memref<16x6xf32, #tpu.memory_space<vmem>>, vector<16x6xf32>
    tpu.vector_store %arg19[%c0_105, %c0_106], %108 {strides = array<i32>} : memref<16x6xf32, #tpu.memory_space<vmem>>, vector<16x6xf32>,
    %c0_107 = arith.constant 0 : index
    %c0_108 = arith.constant 0 : index
    %c0_109 = arith.constant 0 : index
    %110 = vector.load %arg7[%c0_107, %c0_108, %c0_109] : memref<3x32x16xf32, #tpu.memory_space<vmem>>, vector<1x32x16xf32>
    %111 = vector.shape_cast %110 : vector<1x32x16xf32> to vector<32x16xf32>
    %c0_110 = arith.constant 0 : index
    %c0_111 = arith.constant 0 : index
    %112 = vector.load %arg19[%c0_110, %c0_111] : memref<16x6xf32, #tpu.memory_space<vmem>>, vector<16x2xf32>
    %cst_112 = arith.constant dense<0.000000e+00> : vector<32x2xf32>
    %113 = tpu.matmul %111, %112, %cst_112 {dimension_numbers = #tpu.dot_dimension_numbers<[1], [0], [0], [1], [0, 0, 1, 1], [], []>} : vector<32x16xf32>, vector<16x2xf32>, vector<32x2xf32> -> vector<32x2xf32>
    %c1 = arith.constant 1 : index
    %c0_113 = arith.constant 0 : index
    %c0_114 = arith.constant 0 : index
    %114 = vector.load %arg7[%c1, %c0_113, %c0_114] : memref<3x32x16xf32, #tpu.memory_space<vmem>>, vector<1x32x16xf32>
    %115 = vector.shape_cast %114 : vector<1x32x16xf32> to vector<32x16xf32>
    %c0_115 = arith.constant 0 : index
    %c2_116 = arith.constant 2 : index
    %116 = vector.load %arg19[%c0_115, %c2_116] : memref<16x6xf32, #tpu.memory_space<vmem>>, vector<16x2xf32>
    %cst_117 = arith.constant dense<0.000000e+00> : vector<32x2xf32>
    %117 = tpu.matmul %115, %116, %cst_117 {dimension_numbers = #tpu.dot_dimension_numbers<[1], [0], [0], [1], [0, 0, 1, 1], [], []>} : vector<32x16xf32>, vector<16x2xf32>, vector<32x2xf32> -> vector<32x2xf32>
    %118 = arith.addf %113, %117 : vector<32x2xf32>
    %c2_118 = arith.constant 2 : index
    %c0_119 = arith.constant 0 : index
    %c0_120 = arith.constant 0 : index
    %119 = vector.load %arg7[%c2_118, %c0_119, %c0_120] : memref<3x32x16xf32, #tpu.memory_space<vmem>>, vector<1x32x16xf32>
    %120 = vector.shape_cast %119 : vector<1x32x16xf32> to vector<32x16xf32>
    %c0_121 = arith.constant 0 : index
    %c4_122 = arith.constant 4 : index
    %121 = vector.load %arg19[%c0_121, %c4_122] : memref<16x6xf32, #tpu.memory_space<vmem>>, vector<16x2xf32>
    %cst_123 = arith.constant dense<0.000000e+00> : vector<32x2xf32>
    %122 = tpu.matmul %120, %121, %cst_123 {dimension_numbers = #tpu.dot_dimension_numbers<[1], [0], [0], [1], [0, 0, 1, 1], [], []>} : vector<32x16xf32>, vector<16x2xf32>, vector<32x2xf32> -> vector<32x2xf32>
    %123 = arith.addf %118, %122 : vector<32x2xf32>
    %c0_124 = arith.constant 0 : index
    %c0_125 = arith.constant 0 : index
    %124 = vector.load %arg8[%c0_124, %c0_125] : memref<32x1xf32, #tpu.memory_space<vmem>>, vector<32x1xf32>
    %125 = vector.broadcast %124 : vector<32x1xf32> to vector<32x2xf32>
    %126 = arith.addf %123, %125 : vector<32x2xf32>
    %cst_126 = arith.constant 0.000000e+00 : f32
    %127 = vector.broadcast %cst_126 : f32 to vector<32x2xf32>
    %128 = arith.maximumf %126, %127 : vector<32x2xf32>
    %c0_127 = arith.constant 0 : index
    %c0_128 = arith.constant 0 : index
    %129 = vector.load %arg9[%c0_127, %c0_128] : memref<32x32xf32, #tpu.memory_space<vmem>>, vector<32x32xf32>
    %cst_129 = arith.constant dense<0.000000e+00> : vector<32x2xf32>
    %130 = tpu.matmul %129, %128, %cst_129 {dimension_numbers = #tpu.dot_dimension_numbers<[1], [0], [0], [1], [0, 0, 1, 1], [], []>} : vector<32x32xf32>, vector<32x2xf32>, vector<32x2xf32> -> vector<32x2xf32>
    %c0_130 = arith.constant 0 : index
    %c0_131 = arith.constant 0 : index
    %131 = vector.load %arg10[%c0_130, %c0_131] : memref<32x1xf32, #tpu.memory_space<vmem>>, vector<32x1xf32>
    %132 = vector.broadcast %131 : vector<32x1xf32> to vector<32x2xf32>
    %133 = arith.addf %130, %132 : vector<32x2xf32>
    %cst_132 = arith.constant 0.000000e+00 : f32
    %134 = vector.broadcast %cst_132 : f32 to vector<32x2xf32>
    %135 = arith.maximumf %133, %134 : vector<32x2xf32>
    %c0_133 = arith.constant 0 : index
    %c0_134 = arith.constant 0 : index
    %136 = vector.load %arg11[%c0_133, %c0_134] : memref<4x32xf32, #tpu.memory_space<vmem>>, vector<4x32xf32>
    %cst_135 = arith.constant dense<0.000000e+00> : vector<4x2xf32>
    %137 = tpu.matmul %136, %135, %cst_135 {dimension_numbers = #tpu.dot_dimension_numbers<[1], [0], [0], [1], [0, 0, 1, 1], [], []>} : vector<4x32xf32>, vector<32x2xf32>, vector<4x2xf32> -> vector<4x2xf32>
    %c0_136 = arith.constant 0 : index
    %c0_137 = arith.constant 0 : index
    %138 = vector.load %arg12[%c0_136, %c0_137] : memref<4x1xf32, #tpu.memory_space<vmem>>, vector<4x1xf32>
    %139 = vector.broadcast %138 : vector<4x1xf32> to vector<4x2xf32>
    %140 = arith.addf %137, %139 : vector<4x2xf32>
    %c0_138 = arith.constant 0 : index
    %c0_139 = arith.constant 0 : index
    %141 = vector.load %arg13[%c0_138, %c0_139] : memref<4x2xf32, #tpu.memory_space<vmem>>, vector<4x2xf32>
    tpu.vector_store %arg13[%c0_138, %c0_139], %140 {strides = array<i32>} : memref<4x2xf32, #tpu.memory_space<vmem>>, vector<4x2xf32>,
    return
  }
}

</mosaic_0001>

<bundles_post_ra>
// kernel: cnn_actor_forward.1
= control target key start
LH: loop header
LB: loop body
LE: loop exit
PB: predicated region body
PF: predicated region fallthrough
CT: control target
= control target key end

     0   :  { %vm45_vm0 = vcmask 228352   ;;  %v1247_v1 = vmov 0.0|0.0   ;;  %s1248_s27 = smov 126   ;;  %vm1249_vm1 = vmmov 0   ;;  %v1250_v2 = vmov 0.0   ;;  %s1251_s28 = smov 124   ;;  %s1515_s0 = inlined_call_operand.vmem [shape: f32[8,32], index: 0, kind: input, shape index: {}]   ;;  %s1516_s1 = inlined_call_operand.vmem [shape: f32[8,24], index: 1, kind: input, shape index: {}]   ;;  %s1517_s3 = inlined_call_operand.vmem [shape: f32[8,1], index: 3, kind: input, shape index: {}]   ;;  %s1518_s2 = inlined_call_operand.vmem [shape: f32[8,1], index: 2, kind: input, shape index: {}]   ;;  %s1519_s4 = inlined_call_operand.vmem [shape: f32[16,16], index: 4, kind: input, shape index: {}]   ;;  %s1520_s5 = inlined_call_operand.vmem [shape: f32[16,1], index: 5, kind: input, shape index: {}]   ;;  %s1521_s6 = inlined_call_operand.vmem [shape: f32[16,1], index: 6, kind: input, shape index: {}]   ;;  %s1522_s7 = inlined_call_operand.vmem [shape: f32[3,32,16], index: 7, kind: input, shape index: {}]   ;;  %s1523_s8 = inlined_call_operand.vmem [shape: f32[32,1], index: 8, kind: input, shape index: {}]   ;;  %s1524_s10 = inlined_call_operand.vmem [shape: f32[32,1], index: 10, kind: input, shape index: {}]   ;;  %s1525_s12 = inlined_call_operand.vmem [shape: f32[4,1], index: 12, kind: input, shape index: {}]   ;;  %s1526_s9 = inlined_call_operand.vmem [shape: f32[32,32], index: 9, kind: input, shape index: {}]   ;;  %s1527_s11 = inlined_call_operand.vmem [shape: f32[4,32], index: 11, kind: input, shape index: {}]   ;;  %s1528_s13 = inlined_call_operand.vmem [shape: f32[4,2], index: 13, kind: output, shape index: {}]  }
   0x1   :  { %v47_v0 = vld [vmem:[%s1515_s0] sm:$0xff]  ;;  %1178 = vmatprep.subr.bf16.mxu0 %v1247_v1  ;;  %1113 = vmatprep.mubr.msk.f32.mxu0 %vm1249_vm1, %v1250_v2  ;;  %vm63_vm2 = vcmask 195584   ;;  %vm144_vm3 = vcmask 15360   ;;  %s1253_s30 = smov 118   ;;  %s1254_s14 = smov 120   ;;  %vm156_vm4 = vcmask 31760  }
   0x2   :  { %49 = vrot.lane.b32.xlu0 %v47_v0, %s1248_s27  ;;  %46 = vst.msk [vmem:[#allocation2] sm:$0xff] %vm45_vm0, %v47_v0  ;;  %v59_v9 = vld [vmem:[%s1516_s1] sm:$0xff]  ;;  %s1252_s1 = smov 122   ;;  %s1255_s15 = smov 116   ;;  %vm168_vm5 = vcmask 48160   ;;  %vm180_vm6 = vcmask 64560  }
   0x3   :  { %vm192_vm7 = vcmask 80960   ;;  %vm204_vm8 = vcmask 97360   ;;  %vm216_vm9 = vcmask 113760   ;;  %vm219_vm10 = vcmask 113664   ;;  %v241_v36 = vld [vmem:[%s1517_s3] sm:$0xff]  ;;  %v260_v59 = vld [vmem:[%s1519_s4 + $0x8] sm:$0xff] }
   0x4   :  { %v1256_v35 = vmov 0   ;;  %v234_v42 = vld [vmem:[%s1518_s2] sm:$0xff]  ;;  %vm251_vm11 = vcmask 97280   ;;  %vm263_vm12 = vcmask 130048   ;;  %vm407_vm13 = vcmask 48128  }
   0x5   :  { %1229 = vset.pattern.permute.xlu0 %v1256_v35  ;;  %1230 = vset.pattern.permute.xlu1 %v1256_v35  ;;  %v259_v54 = vld [vmem:[%s1519_s4] sm:$0xff]  ;;  %v436_v35 = vld [vmem:[%s1520_s5 + $0x8] sm:$0xff]  ;;  %vm852_vm14 = vcmask 261120   ;;  %vm1034_vm15 = vcmask 11264  }
   0x6   :  { %55 = vrot.lane.b32.xlu0 %v47_v0, %s1251_s28 }
   0x9   :  { %v60_v5 = vld [vmem:[#allocation2] sm:$0xff] }
  0x74   :  { %v50_v3 = vpop.permute.xlu0 %49 }
  0x75   :  { %52 = vst.msk [vmem:[#allocation2 + $0x8] sm:$0xff] %vm45_vm0, %v50_v3 }
  0x78   :  { %v56_v4 = vpop.permute.xlu0 %55 }
  0x79   :  { %58 = vst.msk [vmem:[#allocation2 + $0x10] sm:$0xff] %vm45_vm0, %v56_v4 }
  0x7c   :  { %v61_v6 = vld [vmem:[#allocation2 + $0x8] sm:$0xff] }
  0x7d   :  { %v1179_v7 = vpack.c.bf16 %v61_v6, %v60_v5 }
  0x7f   :  { %1180 = vmatpush3.bf16.msra.mxu0 %v1179_v7 }
  0x80   :  { %1111 = vmatprep.subr.mxu0 %v1250_v2  ;;  %v62_v8 = vld [vmem:[#allocation2 + $0x10] sm:$0xff] }
  0x83   :  { %1112 = vmatpush3.msra.mxu0 %v62_v8 }
  0x84   :  { %1114 = vmatmul.mubr.msk.f32.vlgmr.msra.gmra.mrb[0].mxu0 %vm63_vm2, %v59_v9 }
  0x85   :  { %1120 = vmatprep.mubr.msk.f32.mxu0 %vm263_vm12, %v259_v54 }
 0x157   :  { %v133_v10 = vpop.f32.mrb[0].mxu0 }
 0x158   :  { %137 = vst.msk [vmem:[#allocation3] sm:$0xff] %vm45_vm0, %v133_v10  ;;  %v1115_v11 = vpop.f32.mrb[1].mxu0 }
 0x15f   :  { %v170_v12 = vld [vmem:[#allocation3] sm:$0xff] }
 0x160   :  { %172 = vrot.lane.b32.xlu0 %v170_v12, %s1248_s27  ;;  %148 = vrot.lane.b32.xlu1 %v170_v12, %s1248_s27 }
 0x164   :  { %196 = vrot.lane.b32.xlu0 %v170_v12, %s1248_s27  ;;  %160 = vrot.lane.b32.xlu1 %v170_v12, %s1248_s27 }
 0x168   :  { %184 = vrot.lane.b32.xlu1 %v170_v12, %s1248_s27  ;;  %140 = vrot.lane.b32.xlu0 %v170_v12, %s1248_s27 }
 0x16c   :  { %208 = vrot.lane.b32.xlu1 %v170_v12, %s1248_s27 }
 0x1d2   :  { %v173_v13 = vpop.permute.xlu0 %172  ;;  %v149_v14 = vpop.permute.xlu1 %148 }
 0x1d3   :  { %v151_v15 = vmax.f32 %v170_v12, %v149_v14  ;;  %v175_v18 = vmax.f32 %v170_v12, %v173_v13 }
 0x1d5   :  { %153 = vrot.lane.b32.xlu1 %v151_v15, %s1248_s27 }
 0x1d6   :  { %v197_v16 = vpop.permute.xlu0 %196  ;;  %v161_v17 = vpop.permute.xlu1 %160 }
 0x1d7   :  { %v163_v19 = vmax.f32 %v170_v12, %v161_v17  ;;  %v199_v22 = vmax.f32 %v170_v12, %v197_v16 }
 0x1d9   :  { %177 = vrot.lane.b32.xlu1 %v175_v18, %s1252_s1  ;;  %165 = vrot.lane.b32.xlu0 %v163_v19, %s1251_s28 }
 0x1da   :  { %v185_v20 = vpop.permute.xlu1 %184  ;;  %v141_v21 = vpop.permute.xlu0 %140 }
 0x1db   :  { %v187_v23 = vmax.f32 %v170_v12, %v185_v20  ;;  %v143_v24 = vmax.f32 %v170_v12, %v141_v21 }
 0x1dd   :  { %145 = vst.msk [vmem:[#allocation4] sm:$0xff] %vm144_vm3, %v143_v24  ;;  %201 = vrot.lane.b32.xlu1 %v199_v22, %s1253_s30  ;;  %189 = vrot.lane.b32.xlu0 %v187_v23, %s1254_s14  ;;  %v435_v22 = vld [vmem:[%s1520_s5] sm:$0xff]  ;;  %v450_v24 = vld [vmem:[%s1521_s6 + $0x8] sm:$0xff] }
 0x1de   :  { %v209_v25 = vpop.permute.xlu1 %208  ;;  %v449_v23 = vld [vmem:[%s1521_s6] sm:$0xff] }
 0x1df   :  { %v211_v26 = vmax.f32 %v170_v12, %v209_v25 }
 0x1e1   :  { %213 = vrot.lane.b32.xlu0 %v211_v26, %s1255_s15 }
 0x247   :  { %v154_v27 = vpop.permute.xlu1 %153 }
 0x248   :  { %157 = vst.msk [vmem:[#allocation4] sm:$0xff] %vm156_vm4, %v154_v27 }
 0x24b   :  { %v178_v28 = vpop.permute.xlu1 %177  ;;  %v166_v29 = vpop.permute.xlu0 %165 }
 0x24c   :  { %169 = vst.msk [vmem:[#allocation4] sm:$0xff] %vm168_vm5, %v166_v29 }
 0x24d   :  { %181 = vst.msk [vmem:[#allocation4] sm:$0xff] %vm180_vm6, %v178_v28 }
 0x24f   :  { %v202_v30 = vpop.permute.xlu1 %201  ;;  %v190_v31 = vpop.permute.xlu0 %189 }
 0x250   :  { %193 = vst.msk [vmem:[#allocation4] sm:$0xff] %vm192_vm7, %v190_v31 }
 0x251   :  { %205 = vst.msk [vmem:[#allocation4] sm:$0xff] %vm204_vm8, %v202_v30 }
 0x253   :  { %v214_v32 = vpop.permute.xlu0 %213 }
 0x254   :  { %217 = vst.msk [vmem:[#allocation4] sm:$0xff] %vm216_vm9, %v214_v32 }
 0x25b   :  { %v218_v33 = vld [vmem:[#allocation4] sm:$0xff] }
 0x25c   :  { %v220_v34 = vsel %vm219_vm10, %v218_v33, 0.0 }
 0x25d   :  { %221 = vadd.xlane.f32.xlu1 %v220_v34 }
 0x26e   :  { %244 = vperm.xlu1 %1230, %v241_v36  }
 0x2ea   :  { %v222_v37 = vpop.xlane.xlu1 %221 }
 0x2eb   :  { %v224_v38 = vmul.f32 0.071428575, %v222_v37 }
 0x2ed   :  { %v225_v39 = vsub.f32 %v218_v33, %v224_v38 }
 0x2ee   :  { %v245_v49 = vpop.permute.xlu1 %244 }
 0x2ef   :  { %v226_v40 = vmul.f32 %v225_v39, %v225_v39 }
 0x2f1   :  { %v227_v41 = vsel %vm219_vm10, %v226_v40, 0.0 }
 0x2f2   :  { %228 = vadd.xlane.f32.xlu0 %v227_v41 }
 0x308   :  { %237 = vperm.xlu0 %1229, %v234_v42  }
 0x37f   :  { %v229_v43 = vpop.xlane.xlu0 %228 }
 0x380   :  { %v230_v44 = vmul.f32 0.071428575, %v229_v43 }
 0x382   :  { %v231_v45 = vadd.f32 1e-05, %v230_v44 }
 0x384   :  { %1241 = vrsqrt.f32 %v231_v45 }
 0x387   :  { %v238_v47 = vpop.permute.xlu0 %237 }
 0x38e   :  { %v1242_v46 = vpop.eup %1241 }
 0x38f   :  { %v233_v48 = vmul.f32 %v1242_v46, %v225_v39 }
 0x391   :  { %v240_v50 = vmul.f32 %v238_v47, %v233_v48 }
 0x393   :  { %v247_v51 = vadd.f32 %v245_v49, %v240_v50 }
 0x395   :  { %v248_v52 = vmax.f32 %v247_v51, 0.0 }
 0x397   :  { %249 = vst.msk [vmem:[#allocation4] sm:$0xff] %vm219_vm10, %v248_v52 }
 0x39e   :  { %v253_v53 = vld [vmem:[#allocation4] sm:$0xff] }
 0x39f   :  { %255 = vrot.lane.b32.xlu1 %v253_v53, %s1248_s27  ;;  %252 = vst.msk [vmem:[#allocation5] sm:$0xff] %vm251_vm11, %v253_v53 }
 0x3a6   :  { %v261_v56 = vld [vmem:[#allocation5] sm:$0xff] }
 0x411   :  { %v256_v55 = vpop.permute.xlu1 %255 }
 0x412   :  { %258 = vst.msk [vmem:[#allocation5 + $0x8] sm:$0xff] %vm251_vm11, %v256_v55 }
 0x419   :  { %v262_v57 = vld [vmem:[#allocation5 + $0x8] sm:$0xff] }
 0x41a   :  { %v1181_v58 = vpack.c.bf16 %v262_v57, %v261_v56  ;;  %v1043_v56 = vld [vmem:[%s1522_s7 + $0x20] sm:$0xff] }
 0x41b   :  { %1127 = vmatprep.mubr.msk.f32.mxu1 %vm263_vm12, %v1043_v56 }
 0x41c   :  { %1182 = vmatprep.subr.bf16.mxu0 %v1181_v58 }
 0x41d   :  { %1184 = vmatpush3.bf16.msra.mxu0 %v1181_v58 }
 0x420   :  { %1121 = vmatmul.mubr.msk.f32.vlgmr.msra.gmra.mrb[2].mxu0 %vm263_vm12, %v260_v59 }
 0x4f3   :  { %v1122_v60 = vpop.f32.mrb[2].mxu0 }
 0x4f4   :  { %346 = vst.msk [vmem:[#allocation6 + $0x8] sm:$0xff] %vm251_vm11, %v1122_v60  ;;  %v336_v61 = vpop.f32.mrb[3].mxu0 }
 0x4f5   :  { %345 = vst.msk [vmem:[#allocation6] sm:$0xff] %vm251_vm11, %v336_v61  ;;  %v793_v61 = vld [vmem:[%s1523_s8 + $0x8] sm:$0xff] }
 0x4fb   :  { %v362_v62 = vld [vmem:[#allocation6 + $0x8] sm:$0xff] }
 0x4fc   :  { %367 = vrot.lane.b32.xlu1 %v362_v62, %s1248_s27  ;;  %v361_v63 = vld [vmem:[#allocation6] sm:$0xff] }
 0x500   :  { %365 = vrot.lane.b32.xlu1 %v361_v63, %s1248_s27 }
 0x504   :  { %387 = vrot.lane.b32.xlu1 %v361_v63, %s1248_s27 }
 0x508   :  { %389 = vrot.lane.b32.xlu1 %v362_v62, %s1248_s27 }
 0x50c   :  { %353 = vrot.lane.b32.xlu1 %v362_v62, %s1248_s27 }
 0x510   :  { %351 = vrot.lane.b32.xlu1 %v361_v63, %s1248_s27 }
 0x56e   :  { %v368_v0 = vpop.permute.xlu1 %367 }
 0x56f   :  { %v372_v3 = vmax.f32 %v362_v62, %v368_v0  ;;  %v794_v0 = vld [vmem:[%s1523_s8 + $0x10] sm:$0xff] }
 0x571   :  { %377 = vrot.lane.b32.xlu1 %v372_v3, %s1248_s27  ;;  %v829_v3 = vld [vmem:[%s1524_s10 + $0x8] sm:$0xff] }
 0x572   :  { %v366_v4 = vpop.permute.xlu1 %365 }
 0x573   :  { %v371_v5 = vmax.f32 %v361_v63, %v366_v4  ;;  %v828_v4 = vld [vmem:[%s1524_s10] sm:$0xff] }
 0x575   :  { %375 = vrot.lane.b32.xlu0 %v371_v5, %s1248_s27  ;;  %v831_v5 = vld [vmem:[%s1524_s10 + $0x18] sm:$0xff] }
 0x576   :  { %v388_v6 = vpop.permute.xlu1 %387 }
 0x577   :  { %v393_v7 = vmax.f32 %v361_v63, %v388_v6  ;;  %v830_v6 = vld [vmem:[%s1524_s10 + $0x10] sm:$0xff] }
 0x579   :  { %397 = vrot.lane.b32.xlu0 %v393_v7, %s1251_s28  ;;  %v955_v7 = vld [vmem:[%s1525_s12] sm:$0xf] }
 0x57a   :  { %v390_v8 = vpop.permute.xlu1 %389 }
 0x57b   :  { %v394_v9 = vmax.f32 %v362_v62, %v390_v8 }
 0x57d   :  { %399 = vrot.lane.b32.xlu1 %v394_v9, %s1251_s28 }
 0x57e   :  { %v354_v10 = vpop.permute.xlu1 %353 }
 0x57f   :  { %v358_v11 = vmax.f32 %v362_v62, %v354_v10  ;;  %v792_v62 = vld [vmem:[%s1523_s8] sm:$0xff] }
 0x581   :  { %360 = vst.msk [vmem:[#allocation7 + $0x8] sm:$0xff] %vm144_vm3, %v358_v11 }
 0x582   :  { %v352_v12 = vpop.permute.xlu1 %351 }
 0x583   :  { %v357_v13 = vmax.f32 %v361_v63, %v352_v12  ;;  %v795_v63 = vld [vmem:[%s1523_s8 + $0x18] sm:$0xff] }
 0x585   :  { %359 = vst.msk [vmem:[#allocation7] sm:$0xff] %vm144_vm3, %v357_v13 }
 0x5e3   :  { %v378_v14 = vpop.permute.xlu1 %377 }
 0x5e4   :  { %382 = vst.msk [vmem:[#allocation7 + $0x8] sm:$0xff] %vm156_vm4, %v378_v14 }
 0x5e7   :  { %v376_v15 = vpop.permute.xlu0 %375 }
 0x5e8   :  { %381 = vst.msk [vmem:[#allocation7] sm:$0xff] %vm156_vm4, %v376_v15  ;;  %v1044_v15 = vld [vmem:[%s1522_s7 + $0x28] sm:$0xff] }
 0x5eb   :  { %v398_v16 = vpop.permute.xlu0 %397 }
 0x5ec   :  { %403 = vst.msk [vmem:[#allocation7] sm:$0xff] %vm168_vm5, %v398_v16  ;;  %v1045_v16 = vld [vmem:[%s1522_s7 + $0x30] sm:$0xff] }
 0x5ef   :  { %v400_v17 = vpop.permute.xlu1 %399 }
 0x5f0   :  { %404 = vst.msk [vmem:[#allocation7 + $0x8] sm:$0xff] %vm168_vm5, %v400_v17 }
 0x5f3   :  { %v405_v18 = vld [vmem:[#allocation7] sm:$0xff] }
 0x5f4   :  { %v408_v19 = vsel %vm407_vm13, %v405_v18, 0.0 }
 0x5f5   :  { %409 = vadd.xlane.f32.xlu0 %v408_v19  ;;  %v467_v19 = vld [vmem:[%s1522_s7] sm:$0xff] }
 0x5f7   :  { %v406_v20 = vld [vmem:[#allocation7 + $0x8] sm:$0xff] }
 0x5f8   :  { %v411_v21 = vsel %vm407_vm13, %v406_v20, 0.0 }
 0x5f9   :  { %412 = vadd.xlane.f32.xlu1 %v411_v21  ;;  %v469_v21 = vld [vmem:[%s1522_s7 + $0x10] sm:$0xff] }
 0x60a   :  { %439 = vperm.xlu1 %1230, %v435_v22   ;;  %v470_v22 = vld [vmem:[%s1522_s7 + $0x18] sm:$0xff] }
 0x60e   :  { %453 = vperm.xlu1 %1230, %v449_v23   ;;  %v1055_v23 = vld [vmem:[%s1522_s7 + $0x40] sm:$0xff] }
 0x612   :  { %458 = vperm.xlu1 %1230, %v450_v24   ;;  %v1056_v24 = vld [vmem:[%s1522_s7 + $0x48] sm:$0xff] }
 0x682   :  { %v410_v25 = vpop.xlane.xlu0 %409 }
 0x683   :  { %v415_v26 = vmul.f32 0.16666667, %v410_v25  ;;  %v1057_v25 = vld [vmem:[%s1522_s7 + $0x50] sm:$0xff] }
 0x685   :  { %v417_v29 = vsub.f32 %v405_v18, %v415_v26  ;;  %v1046_v18 = vld [vmem:[%s1522_s7 + $0x38] sm:$0xff] }
 0x686   :  { %v413_v27 = vpop.xlane.xlu1 %412  ;;  %v1058_v26 = vld [vmem:[%s1522_s7 + $0x58] sm:$0xff] }
 0x687   :  { %v416_v28 = vmul.f32 0.16666667, %v413_v27  ;;  %v419_v33 = vmul.f32 %v417_v29, %v417_v29  ;;  %v824_v27 = vld [vmem:[%s1526_s9] sm:$0xff] }
 0x688   :  { %1161 = vmatprep.mubr.msk.f32.mxu0 %vm852_vm14, %v824_v27 }
 0x689   :  { %v418_v30 = vsub.f32 %v406_v20, %v416_v28  ;;  %v421_v34 = vsel %vm407_vm13, %v419_v33, 0.0  ;;  %v468_v20 = vld [vmem:[%s1522_s7 + $0x8] sm:$0xff] }
 0x68a   :  { %v440_v41 = vpop.permute.xlu1 %439 }
 0x68b   :  { %v420_v31 = vmul.f32 %v418_v30, %v418_v30 }
 0x68d   :  { %v424_v32 = vsel %vm407_vm13, %v420_v31, 0.0 }
 0x68e   :  { %425 = vadd.xlane.f32.xlu0 %v424_v32  ;;  %v454_v43 = vpop.permute.xlu1 %453 }
 0x692   :  { %422 = vadd.xlane.f32.xlu0 %v421_v34  ;;  %v459_v49 = vpop.permute.xlu1 %458 }
 0x6a8   :  { %444 = vperm.xlu0 %1229, %v436_v35  }
 0x71b   :  { %v426_v36 = vpop.xlane.xlu0 %425 }
 0x71c   :  { %v428_v37 = vmul.f32 0.16666667, %v426_v36 }
 0x71e   :  { %v430_v38 = vadd.f32 1e-05, %v428_v37 }
 0x71f   :  { %v423_v39 = vpop.xlane.xlu0 %422 }
 0x720   :  { %1243 = vrsqrt.f32 %v430_v38  ;;  %v427_v40 = vmul.f32 0.16666667, %v423_v39 }
 0x722   :  { %v429_v42 = vadd.f32 1e-05, %v427_v40 }
 0x724   :  { %1245 = vrsqrt.f32 %v429_v42 }
 0x727   :  { %v445_v46 = vpop.permute.xlu0 %444 }
 0x72a   :  { %v1244_v44 = vpop.eup %1243 }
 0x72b   :  { %v434_v45 = vmul.f32 %v1244_v44, %v418_v30 }
 0x72d   :  { %v448_v47 = vmul.f32 %v445_v46, %v434_v45  ;;  %v825_v46 = vld [vmem:[%s1526_s9 + $0x8] sm:$0xff] }
 0x72e   :  { %v1246_v48 = vpop.eup %1245 }
 0x72f   :  { %v433_v50 = vmul.f32 %v1246_v48, %v417_v29  ;;  %v462_v51 = vadd.f32 %v459_v49, %v448_v47  ;;  %v826_v47 = vld [vmem:[%s1526_s9 + $0x10] sm:$0xff]  ;;  %v827_v48 = vld [vmem:[%s1526_s9 + $0x18] sm:$0xff] }
 0x731   :  { %v447_v52 = vmul.f32 %v440_v41, %v433_v50  ;;  %v464_v53 = vmax.f32 %v462_v51, 0.0 }
 0x733   :  { %v461_v54 = vadd.f32 %v454_v43, %v447_v52  ;;  %466 = vst.msk [vmem:[#allocation7 + $0x8] sm:$0xff] %vm407_vm13, %v464_v53 }
 0x735   :  { %v463_v55 = vmax.f32 %v461_v54, 0.0 }
 0x737   :  { %465 = vst.msk [vmem:[#allocation7] sm:$0xff] %vm407_vm13, %v463_v55 }
 0x73a   :  { %v472_v58 = vld [vmem:[#allocation7 + $0x8] sm:$0xff] }
 0x73e   :  { %v471_v57 = vld [vmem:[#allocation7] sm:$0xff] }
 0x73f   :  { %v1236_v59 = vpack.i.bf16 %v472_v58, %v471_v57  ;;  %v1189_v60 = vpack.c.bf16 %v472_v58, %v471_v57 }
 0x741   :  { %1237 = vrot.lane.b32.xlu1 %v1236_v59, %s1251_s28  ;;  %1232 = vrot.lane.b32.xlu0 %v1236_v59, %s1248_s27 }
 0x745   :  { %803 = vperm.xlu1 %1230, %v793_v61   ;;  %798 = vperm.xlu0 %1229, %v792_v62  }
 0x749   :  { %813 = vperm.xlu1 %1230, %v795_v63   ;;  %808 = vperm.xlu0 %1229, %v794_v0  }
 0x74d   :  { %839 = vperm.xlu1 %1230, %v829_v3   ;;  %834 = vperm.xlu0 %1229, %v828_v4   ;;  %v954_v4 = vld [vmem:[%s1527_s11] sm:$0xf] }
 0x751   :  { %849 = vperm.xlu1 %1230, %v831_v5   ;;  %844 = vperm.xlu0 %1229, %v830_v6  }
 0x755   :  { %958 = vperm.xlu0 %1229, %v955_v7  }
 0x7b3   :  { %v1233_v8 = vpop.permute.xlu0 %1232  ;;  %v1238_v11 = vpop.permute.xlu1 %1237 }
 0x7b4   :  { %v1235_v9 = vunpack.i.h.bf16 %v1233_v8  ;;  %v1234_v10 = vunpack.i.l.bf16 %v1233_v8  ;;  %v1240_v13 = vunpack.i.h.bf16 %v1238_v11  ;;  %v1239_v14 = vunpack.i.l.bf16 %v1238_v11 }
 0x7b6   :  { %v1185_v12 = vpack.c.bf16 %v1235_v9, %v1234_v10  ;;  %v1193_v17 = vpack.c.bf16 %v1240_v13, %v1239_v14 }
 0x7b8   :  { %1186 = vmatprep.subr.bf16.mxu1 %v1185_v12 }
 0x7b9   :  { %1188 = vmatpush3.bf16.msra.mxu1 %v1185_v12 }
 0x7ba   :  { %1190 = vmatprep.subr.bf16.mxu1 %v1189_v60 }
 0x7bc   :  { %1128 = vmatmul.mubr.msk.f32.vlgmr.msra.gmra.mrb[0].mxu1 %vm263_vm12, %v1044_v15 }
 0x7bd   :  { %1192 = vmatpush3.bf16.msra.mxu1 %v1189_v60  ;;  %1130 = vmatprep.mubr.msk.f32.mxu1 %vm263_vm12, %v1045_v16 }
 0x7be   :  { %1194 = vmatprep.subr.bf16.mxu1 %v1193_v17 }
 0x7c0   :  { %1131 = vmatmul.mubr.msk.f32.gmra.mrb[2].mxu1 %vm263_vm12, %v1046_v18 }
 0x7c1   :  { %1137 = vmatprep.mubr.msk.f32.mxu1 %vm263_vm12, %v467_v19 }
 0x7c4   :  { %1138 = vmatmul.mubr.msk.f32.vlgmr.msra.gmra.mrb[0].mxu1 %vm263_vm12, %v468_v20  ;;  %v804_v28 = vpop.permute.xlu1 %803  ;;  %v799_v29 = vpop.permute.xlu0 %798 }
 0x7c5   :  { %1196 = vmatpush3.bf16.msra.mxu1 %v1193_v17  ;;  %1140 = vmatprep.mubr.msk.f32.mxu1 %vm263_vm12, %v469_v21 }
 0x7c8   :  { %1141 = vmatmul.mubr.msk.f32.gmra.mrb[2].mxu1 %vm263_vm12, %v470_v22  ;;  %v814_v35 = vpop.permute.xlu1 %813  ;;  %v809_v38 = vpop.permute.xlu0 %808 }
 0x7c9   :  { %1147 = vmatprep.mubr.msk.f32.mxu1 %vm263_vm12, %v1055_v23 }
 0x7cc   :  { %1148 = vmatmul.mubr.msk.f32.vlgmr.msra.gmra.mrb[0].mxu1 %vm263_vm12, %v1056_v24  ;;  %v840_v49 = vpop.permute.xlu1 %839  ;;  %v835_v50 = vpop.permute.xlu0 %834 }
 0x7cd   :  { %1150 = vmatprep.mubr.msk.f32.mxu1 %vm263_vm12, %v1057_v25 }
 0x7d0   :  { %1151 = vmatmul.mubr.msk.f32.gmra.mrb[2].mxu1 %vm263_vm12, %v1058_v26  ;;  %v850_v56 = vpop.permute.xlu1 %849  ;;  %v845_v59 = vpop.permute.xlu0 %844 }
 0x7d4   :  { %v959_v5 = vpop.permute.xlu0 %958 }
 0x89f   :  { %v1149_v30 = vpop.f32.mrb[0].mxu1 }
 0x8a0   :  { %v817_v31 = vadd.f32 %v1149_v30, %v804_v28  ;;  %v769_v32 = vpop.f32.mrb[1].mxu1 }
 0x8a1   :  { %v816_v33 = vadd.f32 %v799_v29, %v769_v32 }
 0x8a2   :  { %v821_v34 = vmax.f32 %v817_v31, 0.0 }
 0x8a3   :  { %v820_v36 = vmax.f32 %v816_v33, 0.0  ;;  %v1152_v37 = vpop.f32.mrb[2].mxu1 }
 0x8a4   :  { %v819_v39 = vadd.f32 %v1152_v37, %v814_v35  ;;  %v779_v40 = vpop.f32.mrb[3].mxu1 }
 0x8a5   :  { %v1197_v41 = vpack.c.bf16 %v821_v34, %v820_v36  ;;  %v818_v42 = vadd.f32 %v809_v38, %v779_v40 }
 0x8a6   :  { %v823_v43 = vmax.f32 %v819_v39, 0.0 }
 0x8a7   :  { %v822_v44 = vmax.f32 %v818_v42, 0.0  ;;  %1198 = vmatprep.subr.bf16.mxu0 %v1197_v41 }
 0x8a8   :  { %1200 = vmatpush3.bf16.msra.mxu0 %v1197_v41 }
 0x8a9   :  { %v1201_v45 = vpack.c.bf16 %v823_v43, %v822_v44 }
 0x8ab   :  { %1202 = vmatprep.subr.bf16.mxu0 %v1201_v45 }
 0x8ac   :  { %1204 = vmatpush3.bf16.msra.mxu0 %v1201_v45 }
 0x8ad   :  { %1205 = vmatprep.subr.bf16.mxu0 %v1247_v1 }
 0x8af   :  { %1162 = vmatmul.mubr.msk.f32.vlgmr.msra.gmra.mrb[4].mxu0 %vm852_vm14, %v825_v46 }
 0x8b0   :  { %1164 = vmatprep.mubr.msk.f32.mxu0 %vm852_vm14, %v826_v47 }
 0x8b3   :  { %1165 = vmatmul.mubr.msk.f32.gmra.mrb[6].mxu0 %vm852_vm14, %v827_v48 }
 0x8b4   :  { %1175 = vmatprep.mubr.msk.f32.mxu0 %vm1249_vm1, %v1250_v2 }
 0x982   :  { %v1163_v51 = vpop.f32.mrb[4].mxu0 }
 0x983   :  { %v937_v52 = vadd.f32 %v1163_v51, %v840_v49  ;;  %v931_v53 = vpop.f32.mrb[5].mxu0 }
 0x984   :  { %v932_v54 = vadd.f32 %v931_v53, %v835_v50 }
 0x985   :  { %v951_v55 = vmax.f32 %v937_v52, 0.0 }
 0x986   :  { %v950_v57 = vmax.f32 %v932_v54, 0.0  ;;  %v1166_v58 = vpop.f32.mrb[6].mxu0 }
 0x987   :  { %v947_v60 = vadd.f32 %v1166_v58, %v850_v56  ;;  %v941_v61 = vpop.f32.mrb[7].mxu0 }
 0x988   :  { %v1206_v62 = vpack.c.bf16 %v951_v55, %v950_v57  ;;  %v942_v63 = vadd.f32 %v941_v61, %v845_v59 }
 0x989   :  { %v953_v0 = vmax.f32 %v947_v60, 0.0 }
 0x98a   :  { %v952_v3 = vmax.f32 %v942_v63, 0.0  ;;  %1207 = vmatpush3.bf16.msra.mxu0 %v1206_v62 }
 0x98b   :  { %1208 = vmatprep.subr.bf16.mxu0 %v1247_v1 }
 0x98c   :  { %v1209_v2 = vpack.c.bf16 %v953_v0, %v952_v3 }
 0x98e   :  { %1210 = vmatpush3.bf16.msra.mxu0 %v1209_v2 }
 0x991   :  { %1176 = vmatmul.mubr.msk.f32.vlgmr.msra.gmra.mrb[8].mxu0 %vm852_vm14, %v954_v4 }
 0xa64   :  { %v1030_v6 = vpop.f32.mrb[8].mxu0 }
 0xa65   :  { %v1031_v7 = vadd.f32 %v1030_v6, %v959_v5  ;;  %v1177_v8 = vpop.f32.mrb[9].mxu0 }
 0xa67   :  { %1035 = vst.msk [vmem:[%s1528_s13] sm:$0xf] %vm1034_vm15, %v1031_v7 }

</bundles_post_ra>
